<compile_context>
chip_gen: v7x
topology: tpu7x:2x2x1
jax: 0.10.0
libtpu: 0.0.40
codegen_flags: <defaults>
</compile_context>

<pallas_src>
import functools

import jax
import jax.numpy as jnp
from jax import lax
from jax.experimental import pallas as pl
from jax.experimental.pallas import tpu as pltpu

# ---- CartPole / script constants implied by the module -----------------
INPUT_DIM = 4          # np.prod(CartPole observation space shape) == 4
ACTION_NUM = 2         # CartPole-v1 action space
PARTICLE_N = 16        # args.particle_N (chosen small, deterministic)
HIDDEN = 64            # NN_size == 'big'
OUT_DIM = ACTION_NUM * PARTICLE_N   # 32

MAX_BLOCK_B = 8192     # cap per-tile batch rows purely to bound VMEM


def _round_up(n, m):
    return ((n + m - 1) // m) * m


def _num_parallel_steps():
    """2 grid steps on v7x (2 TensorCores/chip), 1 elsewhere (v5e/v6e)."""
    try:
        kind = jax.devices()[0].device_kind.lower()
    except Exception:
        return 1
    return 2 if "v7" in kind else 1


def _ebrm_mlp_kernel(x_ref, w1_ref, b1_ref, w2_ref, b2_ref, w3_ref, b3_ref,
                     o_ref):
    """Fused 3-layer MLP forward on a (bb, INPUT_DIM) batch tile.

    Matmuls run on the MXU in bf16 with f32 accumulation (weights are in
    PyTorch (out, in) layout and contracted on their last dim, i.e. x @ W^T);
    bias-add and ReLU stay in f32 on the VPU (v5e-safe).
    """
    dn = (((1,), (1,)), ((), ()))                                   # x @ W^T
    xb = x_ref[...].astype(jnp.bfloat16)                            # (bb, 4)
    h1 = lax.dot_general(xb, w1_ref[...].astype(jnp.bfloat16), dn,
                         preferred_element_type=jnp.float32)        # (bb, 64)
    h1 = jnp.maximum(h1 + b1_ref[...], 0.0).astype(jnp.bfloat16)
    h2 = lax.dot_general(h1, w2_ref[...].astype(jnp.bfloat16), dn,
                         preferred_element_type=jnp.float32)        # (bb, 64)
    h2 = jnp.maximum(h2 + b2_ref[...], 0.0).astype(jnp.bfloat16)
    out = lax.dot_general(h2, w3_ref[...].astype(jnp.bfloat16), dn,
                          preferred_element_type=jnp.float32)       # (bb, 32)
    o_ref[...] = (out + b3_ref[...]).astype(o_ref.dtype)


@functools.partial(jax.jit, static_argnames=("block_b",))
def ebrm_forward(x, w1, b1, w2, b2, w3, b3, *, block_b=None):
    """Pallas forward pass.

    x : (B, INPUT_DIM) float32                    (native layout, no padding)
    w1: (HIDDEN, INPUT_DIM)   b1: (1, HIDDEN)     (PyTorch (out, in) weights)
    w2: (HIDDEN, HIDDEN)      b2: (1, HIDDEN)
    w3: (OUT_DIM, HIDDEN)     b3: (1, OUT_DIM)
    returns (B, OUT_DIM) float32
    """
    B = x.shape[0]
    assert x.shape[1] == INPUT_DIM

    if block_b is None:
        steps = _num_parallel_steps()
        bb = _round_up(-(-B // steps), 8)       # cdiv, sublane-aligned
        bb = min(bb, MAX_BLOCK_B)
    else:
        bb = _round_up(int(block_b), 8)
    if bb >= B:
        bb = B                                  # single full-extent tile
    grid = (pl.cdiv(B, bb),)                    # partial last tile is masked

    flops = 2 * B * (INPUT_DIM * HIDDEN + HIDDEN * HIDDEN + HIDDEN * OUT_DIM)
    bytes_accessed = (
        x.size * x.dtype.itemsize
        + B * OUT_DIM * 4
        + sum(a.size * a.dtype.itemsize for a in (w1, b1, w2, b2, w3, b3)))

    return pl.pallas_call(
        _ebrm_mlp_kernel,
        out_shape=jax.ShapeDtypeStruct((B, OUT_DIM), jnp.float32),
        grid=grid,
        in_specs=[
            pl.BlockSpec((bb, INPUT_DIM), lambda i: (i, 0)),        # x tile
            pl.BlockSpec((HIDDEN, INPUT_DIM), lambda i: (0, 0)),    # w1
            pl.BlockSpec((1, HIDDEN), lambda i: (0, 0)),            # b1
            pl.BlockSpec((HIDDEN, HIDDEN), lambda i: (0, 0)),       # w2
            pl.BlockSpec((1, HIDDEN), lambda i: (0, 0)),            # b2
            pl.BlockSpec((OUT_DIM, HIDDEN), lambda i: (0, 0)),      # w3
            pl.BlockSpec((1, OUT_DIM), lambda i: (0, 0)),           # b3
        ],
        out_specs=pl.BlockSpec((bb, OUT_DIM), lambda i: (i, 0)),
        compiler_params=pltpu.CompilerParams(
            dimension_semantics=("parallel",)),
        cost_estimate=pl.CostEstimate(
            flops=flops, transcendentals=0, bytes_accessed=bytes_accessed),
    )(x, w1, b1, w2, b2, w3, b3)


def init_params(key):
    """Deterministic init mimicking PyTorch Linear defaults
    (uniform +-1/sqrt(fan_in)); weights in PyTorch (out, in) layout, biases as
    (1, out) rows so they broadcast over the batch axis."""
    def linear(k, fan_in, fan_out):
        kw, kb = jax.random.split(k)
        bound = 1.0 / jnp.sqrt(fan_in)
        w = jax.random.uniform(kw, (fan_out, fan_in), jnp.float32,
                               -bound, bound)
        b = jax.random.uniform(kb, (1, fan_out), jnp.float32, -bound, bound)
        return w, b

    k1, k2, k3 = jax.random.split(key, 3)
    w1, b1 = linear(k1, INPUT_DIM, HIDDEN)
    w2, b2 = linear(k2, HIDDEN, HIDDEN)
    w3, b3 = linear(k3, HIDDEN, OUT_DIM)
    return w1, b1, w2, b2, w3, b3


def to_inference_params(w1, b1, w2, b2, w3, b3):
    """One-time bf16 weight cast (hoisted out of the per-call forward path);
    biases stay f32 for the f32 bias-add/ReLU epilogue."""
    return (w1.astype(jnp.bfloat16), b1,
            w2.astype(jnp.bfloat16), b2,
            w3.astype(jnp.bfloat16), b3)


def reference_forward(x, w1, b1, w2, b2, w3, b3):
    """Pure-JAX reference mirroring the kernel's bf16/f32 mixed precision."""
    dn = (((1,), (1,)), ((), ()))
    xb = x.astype(jnp.bfloat16)
    h1 = jnp.maximum(
        lax.dot_general(xb, w1.astype(jnp.bfloat16), dn,
                        preferred_element_type=jnp.float32) + b1, 0.0)
    h2 = jnp.maximum(
        lax.dot_general(h1.astype(jnp.bfloat16), w2.astype(jnp.bfloat16), dn,
                        preferred_element_type=jnp.float32) + b2, 0.0)
    return lax.dot_general(h2.astype(jnp.bfloat16), w3.astype(jnp.bfloat16),
                           dn, preferred_element_type=jnp.float32) + b3


def ebrm_forward_auto(x, *params, min_pallas_batch=1024):
    """Batch-size gate (perf-review item): at RL-sized batches the custom-call
    boundary costs more than XLA's fused dot+bias+relu, so only use the Pallas
    kernel for large batches."""
    if x.shape[0] < min_pallas_batch:
        return reference_forward(x, *params)
    return ebrm_forward(x, *params)


if __name__ == "__main__":
    key = jax.random.PRNGKey(0)
    kx, kx2, kp = jax.random.split(key, 3)
    params_f32 = init_params(kp)
    params = to_inference_params(*params_f32)   # hoisted one-time bf16 cast

    # BATCH_SIZE = min(BUFFER_SIZE, 100) in the original script.
    B = 100
    x = jax.random.normal(kx, (B, INPUT_DIM), jnp.float32)
    out = jax.block_until_ready(ebrm_forward(x, *params))
    ref = reference_forward(x, *params_f32)
    assert out.shape == (B, OUT_DIM)
    assert jnp.allclose(out, ref, atol=2e-3, rtol=2e-3), "mismatch vs reference"

    # Multi-tile path with an uneven (masked) boundary block: grid = 3.
    B2 = 300
    x2 = jax.random.normal(kx2, (B2, INPUT_DIM), jnp.float32)
    out2 = jax.block_until_ready(ebrm_forward(x2, *params, block_b=128))
    ref2 = reference_forward(x2, *params_f32)
    assert out2.shape == (B2, OUT_DIM)
    assert jnp.allclose(out2, ref2, atol=2e-3, rtol=2e-3), "mismatch (tiled)"

    # TODO(synk): compute_loss (MMD over gym-sampled transitions) depends on
    # env sampling / python RNG and is not part of forward(); not ported.
    print("KERNEL_OK")
</pallas_src>

<mosaic_0001>
module attributes {stable_mosaic.version = 11 : i64} {
  func.func @_ebrm_mlp_kernel(%arg0: i32, %arg1: memref<100x4xf32, #tpu.memory_space<vmem>>, %arg2: memref<64x4xbf16, #tpu.memory_space<vmem>>, %arg3: memref<1x64xf32, #tpu.memory_space<vmem>>, %arg4: memref<64x64xbf16, #tpu.memory_space<vmem>>, %arg5: memref<1x64xf32, #tpu.memory_space<vmem>>, %arg6: memref<32x64xbf16, #tpu.memory_space<vmem>>, %arg7: memref<1x32xf32, #tpu.memory_space<vmem>>, %arg8: memref<100x32xf32, #tpu.memory_space<vmem>>) attributes {dimension_semantics = [#tpu.dimension_semantics<parallel>], iteration_bounds = array<i64: 1>, scalar_prefetch = 0 : i64, scratch_operands = 0 : i64, tpu.core_type = #tpu.core_type<tc>, window_params = [{transform_indices = @transform_0, window_bounds = array<i64: 100, 4>}, {pipeline_mode = #tpu.pipeline_mode<synchronous>, transform_indices = @transform_1, window_bounds = array<i64: 64, 4>}, {pipeline_mode = #tpu.pipeline_mode<synchronous>, transform_indices = @transform_2, window_bounds = array<i64: 1, 64>}, {pipeline_mode = #tpu.pipeline_mode<synchronous>, transform_indices = @transform_3, window_bounds = array<i64: 64, 64>}, {pipeline_mode = #tpu.pipeline_mode<synchronous>, transform_indices = @transform_4, window_bounds = array<i64: 1, 64>}, {pipeline_mode = #tpu.pipeline_mode<synchronous>, transform_indices = @transform_5, window_bounds = array<i64: 32, 64>}, {pipeline_mode = #tpu.pipeline_mode<synchronous>, transform_indices = @transform_6, window_bounds = array<i64: 1, 32>}, {transform_indices = @transform_7, window_bounds = array<i64: 100, 32>}]} {
    %c0 = arith.constant 0 : index
    %c0_0 = arith.constant 0 : index
    %0 = vector.load %arg1[%c0, %c0_0] : memref<100x4xf32, #tpu.memory_space<vmem>>, vector<100x4xf32>
    %1 = arith.truncf %0 : vector<100x4xf32> to vector<100x4xbf16>
    %c0_1 = arith.constant 0 : index
    %c0_2 = arith.constant 0 : index
    %2 = vector.load %arg2[%c0_1, %c0_2] : memref<64x4xbf16, #tpu.memory_space<vmem>>, vector<64x4xbf16>
    %cst = arith.constant dense<0.000000e+00> : vector<100x64xf32>
    %3 = tpu.matmul %1, %2, %cst {dimension_numbers = #tpu.dot_dimension_numbers<[1], [1], [0], [0], [0, 0, 1, 0], [], []>} : vector<100x4xbf16>, vector<64x4xbf16>, vector<100x64xf32> -> vector<100x64xf32>
    %c0_3 = arith.constant 0 : index
    %c0_4 = arith.constant 0 : index
    %4 = vector.load %arg3[%c0_3, %c0_4] : memref<1x64xf32, #tpu.memory_space<vmem>>, vector<1x64xf32>
    %5 = vector.broadcast %4 : vector<1x64xf32> to vector<100x64xf32>
    %6 = arith.addf %3, %5 : vector<100x64xf32>
    %cst_5 = arith.constant 0.000000e+00 : f32
    %7 = vector.broadcast %cst_5 : f32 to vector<100x64xf32>
    %8 = arith.maximumf %6, %7 : vector<100x64xf32>
    %9 = arith.truncf %8 : vector<100x64xf32> to vector<100x64xbf16>
    %c0_6 = arith.constant 0 : index
    %c0_7 = arith.constant 0 : index
    %10 = vector.load %arg4[%c0_6, %c0_7] : memref<64x64xbf16, #tpu.memory_space<vmem>>, vector<64x64xbf16>
    %cst_8 = arith.constant dense<0.000000e+00> : vector<100x64xf32>
    %11 = tpu.matmul %9, %10, %cst_8 {dimension_numbers = #tpu.dot_dimension_numbers<[1], [1], [0], [0], [0, 0, 1, 0], [], []>} : vector<100x64xbf16>, vector<64x64xbf16>, vector<100x64xf32> -> vector<100x64xf32>
    %c0_9 = arith.constant 0 : index
    %c0_10 = arith.constant 0 : index
    %12 = vector.load %arg5[%c0_9, %c0_10] : memref<1x64xf32, #tpu.memory_space<vmem>>, vector<1x64xf32>
    %13 = vector.broadcast %12 : vector<1x64xf32> to vector<100x64xf32>
    %14 = arith.addf %11, %13 : vector<100x64xf32>
    %cst_11 = arith.constant 0.000000e+00 : f32
    %15 = vector.broadcast %cst_11 : f32 to vector<100x64xf32>
    %16 = arith.maximumf %14, %15 : vector<100x64xf32>
    %17 = arith.truncf %16 : vector<100x64xf32> to vector<100x64xbf16>
    %c0_12 = arith.constant 0 : index
    %c0_13 = arith.constant 0 : index
    %18 = vector.load %arg6[%c0_12, %c0_13] : memref<32x64xbf16, #tpu.memory_space<vmem>>, vector<32x64xbf16>
    %cst_14 = arith.constant dense<0.000000e+00> : vector<100x32xf32>
    %19 = tpu.matmul %17, %18, %cst_14 {dimension_numbers = #tpu.dot_dimension_numbers<[1], [1], [0], [0], [0, 0, 1, 0], [], []>} : vector<100x64xbf16>, vector<32x64xbf16>, vector<100x32xf32> -> vector<100x32xf32>
    %c0_15 = arith.constant 0 : index
    %c0_16 = arith.constant 0 : index
    %20 = vector.load %arg7[%c0_15, %c0_16] : memref<1x32xf32, #tpu.memory_space<vmem>>, vector<1x32xf32>
    %21 = vector.broadcast %20 : vector<1x32xf32> to vector<100x32xf32>
    %22 = arith.addf %19, %21 : vector<100x32xf32>
    %c0_17 = arith.constant 0 : index
    %c0_18 = arith.constant 0 : index
    %23 = vector.load %arg8[%c0_17, %c0_18] : memref<100x32xf32, #tpu.memory_space<vmem>>, vector<100x32xf32>
    tpu.vector_store %arg8[%c0_17, %c0_18], %22 {strides = array<i32>} : memref<100x32xf32, #tpu.memory_space<vmem>>, vector<100x32xf32>,
    return
  }
  func.func @transform_0(%arg0: i32) -> (i32, i32) {
    %c0_i32 = arith.constant 0 : i32
    %c0_i32_0 = arith.constant 0 : i32
    return %arg0, %c0_i32 : i32, i32
  }
  func.func @transform_1(%arg0: i32) -> (i32, i32) {
    %c0_i32 = arith.constant 0 : i32
    %c0_i32_0 = arith.constant 0 : i32
    %c0_i32_1 = arith.constant 0 : i32
    return %c0_i32, %c0_i32_0 : i32, i32
  }
  func.func @transform_2(%arg0: i32) -> (i32, i32) {
    %c0_i32 = arith.constant 0 : i32
    %c0_i32_0 = arith.constant 0 : i32
    %c0_i32_1 = arith.constant 0 : i32
    return %c0_i32, %c0_i32_0 : i32, i32
  }
  func.func @transform_3(%arg0: i32) -> (i32, i32) {
    %c0_i32 = arith.constant 0 : i32
    %c0_i32_0 = arith.constant 0 : i32
    %c0_i32_1 = arith.constant 0 : i32
    return %c0_i32, %c0_i32_0 : i32, i32
  }
  func.func @transform_4(%arg0: i32) -> (i32, i32) {
    %c0_i32 = arith.constant 0 : i32
    %c0_i32_0 = arith.constant 0 : i32
    %c0_i32_1 = arith.constant 0 : i32
    return %c0_i32, %c0_i32_0 : i32, i32
  }
  func.func @transform_5(%arg0: i32) -> (i32, i32) {
    %c0_i32 = arith.constant 0 : i32
    %c0_i32_0 = arith.constant 0 : i32
    %c0_i32_1 = arith.constant 0 : i32
    return %c0_i32, %c0_i32_0 : i32, i32
  }
  func.func @transform_6(%arg0: i32) -> (i32, i32) {
    %c0_i32 = arith.constant 0 : i32
    %c0_i32_0 = arith.constant 0 : i32
    %c0_i32_1 = arith.constant 0 : i32
    return %c0_i32, %c0_i32_0 : i32, i32
  }
  func.func @transform_7(%arg0: i32) -> (i32, i32) {
    %c0_i32 = arith.constant 0 : i32
    %c0_i32_0 = arith.constant 0 : i32
    return %arg0, %c0_i32 : i32, i32
  }
}

</mosaic_0001>

<bundles_post_ra>
// kernel: ebrm_forward.1
= control target key start
LH: loop header
LB: loop body
LE: loop exit
PB: predicated region body
PF: predicated region fallthrough
CT: control target
= control target key end

     0   :  { %vm82_vm0 = vcmask 31744   ;;  %v741_v0 = vmov 0.0   ;;  %vm742_vm1 = vmmov 0   ;;  %vm259_vm2 = vcmask 523264   ;;  %s1027_s1 = inlined_call_operand.vmem [shape: bf16[64,4], index: 1, kind: input, shape index: {}]   ;;  %s1028_s3 = inlined_call_operand.vmem [shape: bf16[64,64], index: 3, kind: input, shape index: {}]   ;;  %s1029_s0 = inlined_call_operand.vmem [shape: f32[100,4], index: 0, kind: input, shape index: {}]   ;;  %s1030_s5 = inlined_call_operand.vmem [shape: bf16[32,64], index: 5, kind: input, shape index: {}]   ;;  %s1031_s2 = inlined_call_operand.vmem [shape: f32[1,64], index: 2, kind: input, shape index: {}]   ;;  %s1032_s4 = inlined_call_operand.vmem [shape: f32[1,64], index: 4, kind: input, shape index: {}]   ;;  %s1033_s6 = inlined_call_operand.vmem [shape: f32[1,32], index: 6, kind: input, shape index: {}]   ;;  %s1034_s7 = inlined_call_operand.vmem [shape: f32[100,32], index: 7, kind: output, shape index: {}]  }
   0x1   :  { %621 = vmatprep.subr.bf16.mxu0 %v741_v0  ;;  %v731_v1 = vld [vmem:[%s1027_s1] sm:$0xff]   ;;  %629 = vmatprep.mubr.msk.bf16.mxu0 %vm742_vm1, %v741_v0  ;;  %v732_v3 = vld [vmem:[%s1027_s1 + $0x8] sm:$0xff]   ;;  %v733_v7 = vld [vmem:[%s1027_s1 + $0x10] sm:$0xff]   ;;  %vm537_vm3 = vcmask 261120   ;;  %vm550_vm4 = vcmask 257024  }
   0x2   :  { %657 = vmatprep.subr.bf16.mxu1 %v741_v0  ;;  %665 = vmatprep.mubr.msk.bf16.mxu1 %vm742_vm1, %v741_v0  ;;  %v105_v2 = vsel %vm82_vm0, %v731_v1, 0  ;;  %v108_v4 = vsel %vm82_vm0, %v732_v3, 0  ;;  %v735_v5 = vld [vmem:[%s1028_s3] sm:$0xff]   ;;  %v736_v8 = vld [vmem:[%s1028_s3 + $0x8] sm:$0xff]   ;;  %v111_v9 = vsel %vm82_vm0, %v733_v7, 0  ;;  %v734_v11 = vld [vmem:[%s1027_s1 + $0x18] sm:$0xff]  }
   0x3   :  { %622 = vmatpush3.bf16.xpose.msra.mxu0 %v105_v2  ;;  %v282_v6 = vsel %vm259_vm2, %v735_v5, 0  ;;  %v285_v10 = vsel %vm259_vm2, %v736_v8, 0  ;;  %v737_v12 = vld [vmem:[%s1028_s3 + $0x10] sm:$0xff]   ;;  %v114_v13 = vsel %vm82_vm0, %v734_v11, 0  ;;  %v27_v15 = vld [vmem:[%s1029_s0] sm:$0xff]  ;;  %v28_v16 = vld [vmem:[%s1029_s0 + $0x8] sm:$0xff] }
   0x4   :  { %623 = vmatprep.subr.bf16.mxu0 %v741_v0  ;;  %658 = vmatpush3.bf16.xpose.msra.mxu1 %v282_v6  ;;  %v288_v14 = vsel %vm259_vm2, %v737_v12, 0  ;;  %v40_v17 = vpack.c.bf16 %v28_v16, %v27_v15  ;;  %v29_v18 = vld [vmem:[%s1029_s0 + $0x10] sm:$0xff]  ;;  %v30_v19 = vld [vmem:[%s1029_s0 + $0x18] sm:$0xff]  ;;  %v31_v21 = vld [vmem:[%s1029_s0 + $0x20] sm:$0xff] }
   0x5   :  { %659 = vmatprep.subr.bf16.mxu1 %v741_v0  ;;  %v41_v20 = vpack.c.bf16 %v30_v19, %v29_v18  ;;  %v32_v22 = vld [vmem:[%s1029_s0 + $0x28] sm:$0xff]  ;;  %v33_v24 = vld [vmem:[%s1029_s0 + $0x30] sm:$0xff]  ;;  %v34_v25 = vld [vmem:[%s1029_s0 + $0x38] sm:$0xff] }
   0x6   :  { %v42_v23 = vpack.c.bf16 %v32_v22, %v31_v21  ;;  %v43_v26 = vpack.c.bf16 %v34_v25, %v33_v24  ;;  %v35_v27 = vld [vmem:[%s1029_s0 + $0x40] sm:$0xff]  ;;  %v36_v28 = vld [vmem:[%s1029_s0 + $0x48] sm:$0xff]  ;;  %v37_v30 = vld [vmem:[%s1029_s0 + $0x50] sm:$0xff] }
   0x7   :  { %v44_v29 = vpack.c.bf16 %v36_v28, %v35_v27  ;;  %v38_v31 = vld [vmem:[%s1029_s0 + $0x58] sm:$0xff]  ;;  %v39_v33 = vld [vmem:[%s1029_s0 + $0x60] sm:$0xf] }
   0x8   :  { %v45_v32 = vpack.c.bf16 %v38_v31, %v37_v30  ;;  %v46_v34 = vpack.c.bf16 %v39_v33, %v39_v33  ;;  %v738_v35 = vld [vmem:[%s1028_s3 + $0x18] sm:$0xff]   ;;  %v739_v37 = vld [vmem:[%s1030_s5] sm:$0xff]  }
   0x9   :  { %v291_v36 = vsel %vm259_vm2, %v738_v35, 0  ;;  %v444_v38 = vsel %vm259_vm2, %v739_v37, 0  ;;  %v897_v39 = vld [vmem:[%s1031_s2] ss:$0 sm:$0xff] }
   0xb   :  { %624 = vmatpush3.bf16.xpose.msra.mxu0 %v108_v4 }
   0xc   :  { %625 = vmatprep.subr.bf16.mxu0 %v741_v0  ;;  %660 = vmatpush3.bf16.xpose.msra.mxu1 %v285_v10 }
   0xd   :  { %661 = vmatprep.subr.bf16.mxu1 %v741_v0 }
  0x13   :  { %626 = vmatpush3.bf16.xpose.msra.mxu0 %v111_v9 }
  0x14   :  { %627 = vmatprep.subr.bf16.mxu0 %v741_v0  ;;  %662 = vmatpush3.bf16.xpose.msra.mxu1 %v288_v14 }
  0x15   :  { %663 = vmatprep.subr.bf16.mxu1 %v741_v0 }
  0x1b   :  { %628 = vmatpush3.bf16.xpose.msra.mxu0 %v114_v13 }
  0x1c   :  { %693 = vmatprep.subr.bf16.mxu0 %v741_v0  ;;  %664 = vmatpush3.bf16.xpose.msra.mxu1 %v291_v36 }
  0x1d   :  { %725 = vmatprep.subr.bf16.mxu1 %v741_v0 }
  0x22   :  { %630 = vmatmul.mubr.msk.bf16.vlgmr.msra.gmra.mrb[0].mxu0 %vm82_vm0, %v40_v17 }
  0x23   :  { %633 = vmatprep.mubr.msk.bf16.mxu0 %vm742_vm1, %v741_v0  ;;  %694 = vmatpush3.bf16.xpose.msra.mxu0 %v444_v38 }
  0x24   :  { %695 = vmatprep.subr.bf16.mxu0 %v741_v0 }
  0x2a   :  { %634 = vmatmul.mubr.msk.bf16.gmra.mrb[4].mxu0 %vm82_vm0, %v41_v20 }
  0x2b   :  { %637 = vmatprep.mubr.msk.bf16.mxu0 %vm742_vm1, %v741_v0 }
  0x32   :  { %638 = vmatmul.mubr.msk.bf16.gmra.mrb[8].mxu0 %vm82_vm0, %v42_v23 }
  0x33   :  { %641 = vmatprep.mubr.msk.bf16.mxu0 %vm742_vm1, %v741_v0 }
  0x3a   :  { %642 = vmatmul.mubr.msk.bf16.gmra.mrb[12].mxu0 %vm82_vm0, %v43_v26 }
  0x3b   :  { %645 = vmatprep.mubr.msk.bf16.mxu0 %vm742_vm1, %v741_v0 }
  0x42   :  { %646 = vmatmul.mubr.msk.bf16.gmra.mrb[16].mxu0 %vm82_vm0, %v44_v29 }
  0x43   :  { %649 = vmatprep.mubr.msk.bf16.mxu0 %vm742_vm1, %v741_v0 }
  0x4a   :  { %650 = vmatmul.mubr.msk.bf16.gmra.mrb[20].mxu0 %vm82_vm0, %v45_v32 }
  0x4b   :  { %653 = vmatprep.mubr.msk.bf16.mxu0 %vm742_vm1, %v741_v0 }
  0x52   :  { %654 = vmatmul.mubr.msk.bf16.gmra.mrb[24].mxu0 %vm82_vm0, %v46_v34 }
  0x53   :  { %697 = vmatprep.mubr.msk.bf16.mxu0 %vm742_vm1, %v741_v0 }
  0xf5   :  { %v150_v40 = vpop.f32.mrb[0].mxu0 }
  0xf6   :  { %v151_v41 = vadd.f32 %v897_v39, %v150_v40  ;;  %v631_v42 = vpop.f32.mrb[1].mxu0  ;;  %v941_v40 = vld [vmem:[%s1032_s4] ss:$0 sm:$0xff] }
  0xf7   :  { %v153_v43 = vpop.f32.mrb[2].mxu0 }
  0xf8   :  { %v154_v44 = vadd.f32 %v897_v39, %v153_v43  ;;  %v632_v45 = vpop.f32.mrb[3].mxu0  ;;  %v204_v46 = vmax.f32 %v151_v41, 0.0 }
  0xfa   :  { %v205_v47 = vmax.f32 %v154_v44, 0.0 }
  0xfc   :  { %v217_v48 = vpack.c.bf16 %v205_v47, %v204_v46 }
  0xfd   :  { %v158_v49 = vpop.f32.mrb[4].mxu0 }
  0xfe   :  { %v159_v50 = vadd.f32 %v897_v39, %v158_v49  ;;  %v635_v51 = vpop.f32.mrb[5].mxu0  ;;  %666 = vmatmul.mubr.msk.bf16.vlgmr.msra.gmra.mrb[0].mxu1 %vm259_vm2, %v217_v48 }
  0xff   :  { %v161_v52 = vpop.f32.mrb[6].mxu0  ;;  %669 = vmatprep.mubr.msk.bf16.mxu1 %vm742_vm1, %v741_v0  ;;  %727 = vmatpush3.bf16.xpose.msra.mxu1 %v444_v38  ;;  %v740_v38 = vld [vmem:[%s1030_s5 + $0x8] sm:$0xff]  }
 0x100   :  { %v162_v53 = vadd.f32 %v897_v39, %v161_v52  ;;  %v636_v54 = vpop.f32.mrb[7].mxu0  ;;  %726 = vmatprep.subr.bf16.mxu1 %v741_v0  ;;  %v206_v55 = vmax.f32 %v159_v50, 0.0 }
 0x102   :  { %v207_v56 = vmax.f32 %v162_v53, 0.0 }
 0x104   :  { %v218_v57 = vpack.c.bf16 %v207_v56, %v206_v55 }
 0x105   :  { %v166_v58 = vpop.f32.mrb[8].mxu0 }
 0x106   :  { %v167_v59 = vadd.f32 %v897_v39, %v166_v58  ;;  %v639_v60 = vpop.f32.mrb[9].mxu0  ;;  %670 = vmatmul.mubr.msk.bf16.gmra.mrb[4].mxu1 %vm259_vm2, %v218_v57 }
 0x107   :  { %v169_v61 = vpop.f32.mrb[10].mxu0  ;;  %673 = vmatprep.mubr.msk.bf16.mxu1 %vm742_vm1, %v741_v0 }
 0x108   :  { %v170_v62 = vadd.f32 %v897_v39, %v169_v61  ;;  %v640_v63 = vpop.f32.mrb[11].mxu0  ;;  %v208_v1 = vmax.f32 %v167_v59, 0.0 }
 0x10a   :  { %v209_v2 = vmax.f32 %v170_v62, 0.0 }
 0x10c   :  { %v219_v3 = vpack.c.bf16 %v209_v2, %v208_v1 }
 0x10d   :  { %v174_v4 = vpop.f32.mrb[12].mxu0 }
 0x10e   :  { %v175_v5 = vadd.f32 %v897_v39, %v174_v4  ;;  %v643_v6 = vpop.f32.mrb[13].mxu0  ;;  %674 = vmatmul.mubr.msk.bf16.gmra.mrb[8].mxu1 %vm259_vm2, %v219_v3 }
 0x10f   :  { %v177_v7 = vpop.f32.mrb[14].mxu0  ;;  %677 = vmatprep.mubr.msk.bf16.mxu1 %vm742_vm1, %v741_v0 }
 0x110   :  { %v178_v8 = vadd.f32 %v897_v39, %v177_v7  ;;  %v644_v9 = vpop.f32.mrb[15].mxu0  ;;  %v210_v10 = vmax.f32 %v175_v5, 0.0 }
 0x112   :  { %v211_v11 = vmax.f32 %v178_v8, 0.0 }
 0x114   :  { %v220_v12 = vpack.c.bf16 %v211_v11, %v210_v10 }
 0x115   :  { %v182_v13 = vpop.f32.mrb[16].mxu0 }
 0x116   :  { %v183_v14 = vadd.f32 %v897_v39, %v182_v13  ;;  %v647_v15 = vpop.f32.mrb[17].mxu0  ;;  %678 = vmatmul.mubr.msk.bf16.gmra.mrb[12].mxu1 %vm259_vm2, %v220_v12 }
 0x117   :  { %v185_v16 = vpop.f32.mrb[18].mxu0  ;;  %681 = vmatprep.mubr.msk.bf16.mxu1 %vm742_vm1, %v741_v0 }
 0x118   :  { %v186_v17 = vadd.f32 %v897_v39, %v185_v16  ;;  %v648_v18 = vpop.f32.mrb[19].mxu0  ;;  %v212_v19 = vmax.f32 %v183_v14, 0.0 }
 0x11a   :  { %v213_v20 = vmax.f32 %v186_v17, 0.0 }
 0x11c   :  { %v221_v21 = vpack.c.bf16 %v213_v20, %v212_v19 }
 0x11d   :  { %v190_v22 = vpop.f32.mrb[20].mxu0 }
 0x11e   :  { %v191_v23 = vadd.f32 %v897_v39, %v190_v22  ;;  %v651_v24 = vpop.f32.mrb[21].mxu0  ;;  %682 = vmatmul.mubr.msk.bf16.gmra.mrb[16].mxu1 %vm259_vm2, %v221_v21 }
 0x11f   :  { %v193_v25 = vpop.f32.mrb[22].mxu0  ;;  %685 = vmatprep.mubr.msk.bf16.mxu1 %vm742_vm1, %v741_v0 }
 0x120   :  { %v194_v26 = vadd.f32 %v897_v39, %v193_v25  ;;  %v652_v27 = vpop.f32.mrb[23].mxu0  ;;  %v214_v28 = vmax.f32 %v191_v23, 0.0 }
 0x122   :  { %v215_v29 = vmax.f32 %v194_v26, 0.0 }
 0x124   :  { %v222_v30 = vpack.c.bf16 %v215_v29, %v214_v28 }
 0x125   :  { %v198_v31 = vpop.f32.mrb[24].mxu0 }
 0x126   :  { %v199_v32 = vadd.f32 %v897_v39, %v198_v31  ;;  %686 = vmatmul.mubr.msk.bf16.gmra.mrb[20].mxu1 %vm259_vm2, %v222_v30  ;;  %v655_v33 = vpop.f32.mrb[25].mxu0  ;;  %v447_v39 = vsel %vm259_vm2, %v740_v38, 0 }
 0x127   :  { %v201_v34 = vpop.f32.mrb[26].mxu0  ;;  %689 = vmatprep.mubr.msk.bf16.mxu1 %vm742_vm1, %v741_v0  ;;  %696 = vmatpush3.bf16.xpose.msra.mxu0 %v447_v39 }
 0x128   :  { %v216_v35 = vmax.f32 %v199_v32, 0.0  ;;  %v656_v36 = vpop.f32.mrb[27].mxu0  ;;  %728 = vmatpush3.bf16.xpose.msra.mxu1 %v447_v39  ;;  %v580_v39 = vld [vmem:[%s1033_s6] ss:$0 sm:$0xff] }
 0x12a   :  { %v223_v37 = vpack.c.bf16 %v216_v35, %v216_v35 }
 0x12e   :  { %690 = vmatmul.mubr.msk.bf16.gmra.mrb[24].mxu1 %vm259_vm2, %v223_v37 }
 0x12f   :  { %713 = vmatprep.mubr.msk.bf16.mxu1 %vm742_vm1, %v741_v0 }
 0x1d1   :  { %v327_v41 = vpop.f32.mrb[0].mxu1 }
 0x1d2   :  { %v328_v42 = vadd.f32 %v941_v40, %v327_v41  ;;  %v667_v43 = vpop.f32.mrb[1].mxu1 }
 0x1d3   :  { %v330_v44 = vpop.f32.mrb[2].mxu1 }
 0x1d4   :  { %v331_v45 = vadd.f32 %v941_v40, %v330_v44  ;;  %v668_v46 = vpop.f32.mrb[3].mxu1  ;;  %v381_v47 = vmax.f32 %v328_v42, 0.0 }
 0x1d6   :  { %v382_v48 = vmax.f32 %v331_v45, 0.0 }
 0x1d8   :  { %v394_v49 = vpack.c.bf16 %v382_v48, %v381_v47 }
 0x1d9   :  { %v335_v50 = vpop.f32.mrb[4].mxu1 }
 0x1da   :  { %v336_v51 = vadd.f32 %v941_v40, %v335_v50  ;;  %v671_v52 = vpop.f32.mrb[5].mxu1  ;;  %698 = vmatmul.mubr.msk.bf16.vlgmr.msra.gmra.mrb[28].mxu0 %vm259_vm2, %v394_v49 }
 0x1db   :  { %v338_v53 = vpop.f32.mrb[6].mxu1  ;;  %701 = vmatprep.mubr.msk.bf16.mxu0 %vm742_vm1, %v741_v0 }
 0x1dc   :  { %v339_v54 = vadd.f32 %v941_v40, %v338_v53  ;;  %v672_v55 = vpop.f32.mrb[7].mxu1  ;;  %v383_v56 = vmax.f32 %v336_v51, 0.0 }
 0x1de   :  { %v384_v57 = vmax.f32 %v339_v54, 0.0 }
 0x1e0   :  { %v395_v58 = vpack.c.bf16 %v384_v57, %v383_v56 }
 0x1e1   :  { %v343_v59 = vpop.f32.mrb[8].mxu1 }
 0x1e2   :  { %v344_v60 = vadd.f32 %v941_v40, %v343_v59  ;;  %v675_v61 = vpop.f32.mrb[9].mxu1  ;;  %702 = vmatmul.mubr.msk.bf16.gmra.mrb[32].mxu0 %vm259_vm2, %v395_v58 }
 0x1e3   :  { %v346_v62 = vpop.f32.mrb[10].mxu1  ;;  %705 = vmatprep.mubr.msk.bf16.mxu0 %vm742_vm1, %v741_v0 }
 0x1e4   :  { %v347_v63 = vadd.f32 %v941_v40, %v346_v62  ;;  %v676_v1 = vpop.f32.mrb[11].mxu1  ;;  %v385_v2 = vmax.f32 %v344_v60, 0.0 }
 0x1e6   :  { %v386_v3 = vmax.f32 %v347_v63, 0.0 }
 0x1e8   :  { %v396_v4 = vpack.c.bf16 %v386_v3, %v385_v2 }
 0x1e9   :  { %v351_v5 = vpop.f32.mrb[12].mxu1 }
 0x1ea   :  { %v352_v6 = vadd.f32 %v941_v40, %v351_v5  ;;  %v679_v7 = vpop.f32.mrb[13].mxu1  ;;  %706 = vmatmul.mubr.msk.bf16.gmra.mrb[36].mxu0 %vm259_vm2, %v396_v4 }
 0x1eb   :  { %v354_v8 = vpop.f32.mrb[14].mxu1  ;;  %709 = vmatprep.mubr.msk.bf16.mxu0 %vm742_vm1, %v741_v0 }
 0x1ec   :  { %v355_v9 = vadd.f32 %v941_v40, %v354_v8  ;;  %v680_v10 = vpop.f32.mrb[15].mxu1  ;;  %v387_v11 = vmax.f32 %v352_v6, 0.0 }
 0x1ee   :  { %v388_v12 = vmax.f32 %v355_v9, 0.0 }
 0x1f0   :  { %v397_v13 = vpack.c.bf16 %v388_v12, %v387_v11 }
 0x1f1   :  { %v359_v14 = vpop.f32.mrb[16].mxu1 }
 0x1f2   :  { %v360_v15 = vadd.f32 %v941_v40, %v359_v14  ;;  %v683_v16 = vpop.f32.mrb[17].mxu1  ;;  %710 = vmatmul.mubr.msk.bf16.gmra.mrb[40].mxu0 %vm259_vm2, %v397_v13 }
 0x1f3   :  { %v362_v17 = vpop.f32.mrb[18].mxu1 }
 0x1f4   :  { %v363_v18 = vadd.f32 %v941_v40, %v362_v17  ;;  %v684_v19 = vpop.f32.mrb[19].mxu1  ;;  %v389_v20 = vmax.f32 %v360_v15, 0.0 }
 0x1f6   :  { %v390_v21 = vmax.f32 %v363_v18, 0.0 }
 0x1f8   :  { %v398_v22 = vpack.c.bf16 %v390_v21, %v389_v20 }
 0x1f9   :  { %v367_v23 = vpop.f32.mrb[20].mxu1 }
 0x1fa   :  { %v368_v24 = vadd.f32 %v941_v40, %v367_v23  ;;  %v687_v25 = vpop.f32.mrb[21].mxu1  ;;  %714 = vmatmul.mubr.msk.bf16.vlgmr.msra.gmra.mrb[28].mxu1 %vm259_vm2, %v398_v22 }
 0x1fb   :  { %v370_v26 = vpop.f32.mrb[22].mxu1  ;;  %717 = vmatprep.mubr.msk.bf16.mxu1 %vm742_vm1, %v741_v0 }
 0x1fc   :  { %v371_v27 = vadd.f32 %v941_v40, %v370_v26  ;;  %v688_v28 = vpop.f32.mrb[23].mxu1  ;;  %v391_v29 = vmax.f32 %v368_v24, 0.0 }
 0x1fe   :  { %v392_v30 = vmax.f32 %v371_v27, 0.0 }
 0x200   :  { %v399_v31 = vpack.c.bf16 %v392_v30, %v391_v29 }
 0x201   :  { %v375_v32 = vpop.f32.mrb[24].mxu1 }
 0x202   :  { %v376_v33 = vadd.f32 %v941_v40, %v375_v32  ;;  %v691_v34 = vpop.f32.mrb[25].mxu1  ;;  %718 = vmatmul.mubr.msk.bf16.gmra.mrb[32].mxu1 %vm259_vm2, %v399_v31 }
 0x203   :  { %v378_v35 = vpop.f32.mrb[26].mxu1  ;;  %721 = vmatprep.mubr.msk.bf16.mxu1 %vm742_vm1, %v741_v0 }
 0x204   :  { %v393_v36 = vmax.f32 %v376_v33, 0.0  ;;  %v692_v37 = vpop.f32.mrb[27].mxu1 }
 0x206   :  { %v400_v38 = vpack.c.bf16 %v393_v36, %v393_v36 }
 0x20a   :  { %722 = vmatmul.mubr.msk.bf16.gmra.mrb[36].mxu1 %vm259_vm2, %v400_v38 }
 0x2ad   :  { %v483_v41 = vpop.f32.mrb[28].mxu0 }
 0x2ae   :  { %v484_v42 = vadd.f32 %v580_v39, %v483_v41  ;;  %v699_v40 = vpop.f32.mrb[29].mxu0 }
 0x2af   :  { %v486_v43 = vpop.f32.mrb[30].mxu0 }
 0x2b0   :  { %538 = vst.msk [vmem:[%s1034_s7] sm:$0xff] %vm537_vm3, %v484_v42  ;;  %v487_v0 = vadd.f32 %v580_v39, %v486_v43  ;;  %v700_v44 = vpop.f32.mrb[31].mxu0 }
 0x2b2   :  { %539 = vst.msk [vmem:[%s1034_s7 + $0x8] sm:$0xff] %vm537_vm3, %v487_v0 }
 0x2b5   :  { %v491_v45 = vpop.f32.mrb[32].mxu0 }
 0x2b6   :  { %v492_v46 = vadd.f32 %v580_v39, %v491_v45  ;;  %v703_v47 = vpop.f32.mrb[33].mxu0 }
 0x2b7   :  { %v494_v48 = vpop.f32.mrb[34].mxu0 }
 0x2b8   :  { %540 = vst.msk [vmem:[%s1034_s7 + $0x10] sm:$0xff] %vm537_vm3, %v492_v46  ;;  %v495_v49 = vadd.f32 %v580_v39, %v494_v48  ;;  %v704_v50 = vpop.f32.mrb[35].mxu0 }
 0x2ba   :  { %541 = vst.msk [vmem:[%s1034_s7 + $0x18] sm:$0xff] %vm537_vm3, %v495_v49 }
 0x2bd   :  { %v499_v51 = vpop.f32.mrb[36].mxu0 }
 0x2be   :  { %v500_v52 = vadd.f32 %v580_v39, %v499_v51  ;;  %v707_v53 = vpop.f32.mrb[37].mxu0 }
 0x2bf   :  { %v502_v54 = vpop.f32.mrb[38].mxu0 }
 0x2c0   :  { %542 = vst.msk [vmem:[%s1034_s7 + $0x20] sm:$0xff] %vm537_vm3, %v500_v52  ;;  %v503_v55 = vadd.f32 %v580_v39, %v502_v54  ;;  %v708_v56 = vpop.f32.mrb[39].mxu0 }
 0x2c2   :  { %543 = vst.msk [vmem:[%s1034_s7 + $0x28] sm:$0xff] %vm537_vm3, %v503_v55 }
 0x2c5   :  { %v507_v57 = vpop.f32.mrb[40].mxu0 }
 0x2c6   :  { %v508_v58 = vadd.f32 %v580_v39, %v507_v57  ;;  %v711_v59 = vpop.f32.mrb[41].mxu0 }
 0x2c7   :  { %v510_v60 = vpop.f32.mrb[42].mxu0 }
 0x2c8   :  { %544 = vst.msk [vmem:[%s1034_s7 + $0x30] sm:$0xff] %vm537_vm3, %v508_v58  ;;  %v511_v61 = vadd.f32 %v580_v39, %v510_v60  ;;  %v712_v62 = vpop.f32.mrb[43].mxu0 }
 0x2ca   :  { %545 = vst.msk [vmem:[%s1034_s7 + $0x38] sm:$0xff] %vm537_vm3, %v511_v61 }
 0x2cd   :  { %v515_v63 = vpop.f32.mrb[28].mxu1 }
 0x2ce   :  { %v516_v1 = vadd.f32 %v580_v39, %v515_v63  ;;  %v715_v2 = vpop.f32.mrb[29].mxu1 }
 0x2cf   :  { %v518_v3 = vpop.f32.mrb[30].mxu1 }
 0x2d0   :  { %546 = vst.msk [vmem:[%s1034_s7 + $0x40] sm:$0xff] %vm537_vm3, %v516_v1  ;;  %v519_v4 = vadd.f32 %v580_v39, %v518_v3  ;;  %v716_v5 = vpop.f32.mrb[31].mxu1 }
 0x2d2   :  { %547 = vst.msk [vmem:[%s1034_s7 + $0x48] sm:$0xff] %vm537_vm3, %v519_v4 }
 0x2d5   :  { %v523_v6 = vpop.f32.mrb[32].mxu1 }
 0x2d6   :  { %v524_v7 = vadd.f32 %v580_v39, %v523_v6  ;;  %v719_v8 = vpop.f32.mrb[33].mxu1 }
 0x2d7   :  { %v526_v9 = vpop.f32.mrb[34].mxu1 }
 0x2d8   :  { %548 = vst.msk [vmem:[%s1034_s7 + $0x50] sm:$0xff] %vm537_vm3, %v524_v7  ;;  %v527_v10 = vadd.f32 %v580_v39, %v526_v9  ;;  %v720_v11 = vpop.f32.mrb[35].mxu1 }
 0x2da   :  { %549 = vst.msk [vmem:[%s1034_s7 + $0x58] sm:$0xff] %vm537_vm3, %v527_v10 }
 0x2dd   :  { %v531_v12 = vpop.f32.mrb[36].mxu1 }
 0x2de   :  { %v532_v13 = vadd.f32 %v580_v39, %v531_v12  ;;  %v723_v14 = vpop.f32.mrb[37].mxu1 }
 0x2df   :  { %v534_v15 = vpop.f32.mrb[38].mxu1 }
 0x2e0   :  { %551 = vst.msk [vmem:[%s1034_s7 + $0x60] sm:$0xf] %vm550_vm4, %v532_v13  ;;  %v724_v16 = vpop.f32.mrb[39].mxu1 }

</bundles_post_ra>
